<compile_context>
chip_gen: v5e
topology: v5e:2x2
jax: 0.10.0
libtpu: 0.0.40
codegen_flags: <defaults>
</compile_context>

<pallas_src>
import jax
import jax.numpy as jnp
from jax.experimental import pallas as pl
from jax.experimental.pallas import tpu as pltpu

NEG_SLOPE = 0.01
F_IN = 9        # fc1 input features
HIDDEN = 128    # hidden width
F_OUT = 2       # fc3 output features


def _round_up(n, m):
    return ((n + m - 1) // m) * m


def _mlp_kernel(x_ref, w1_ref, b1_ref, w2_ref, b2_ref, w3_ref, b3_ref, o_ref):
    """fc1(+bn1) -> leaky_relu -> fc2(+bn2) -> leaky_relu -> fc3.

    x_ref:  (TB, 9)    f32
    w1_ref: (9, 128)   f32   (bn1 folded in)
    b1_ref: (1, 128)   f32
    w2_ref: (128, 128) bf16  (bn2 folded in)
    b2_ref: (1, 128)   f32
    w3_ref: (128, 2)   f32
    b3_ref: (1, 2)     f32
    o_ref:  (TB, 2)    f32
    """
    # fc1 + folded bn1 (K=9 contracted directly, f32) -> leaky_relu.
    # dropout1 = identity in eval mode.
    h = jnp.dot(x_ref[...], w1_ref[...], preferred_element_type=jnp.float32)
    h = h + b1_ref[...]
    h = jnp.where(h > 0, h, NEG_SLOPE * h)

    # fc2 + folded bn2 (bf16 operands, f32 accumulate) -> leaky_relu.
    # dropout2 = identity in eval mode.
    h = jnp.dot(h.astype(w2_ref.dtype), w2_ref[...],
                preferred_element_type=jnp.float32)
    h = h + b2_ref[...]
    h = jnp.where(h > 0, h, NEG_SLOPE * h)

    # fc3 (N=2 written directly; masked vst at this width is negligible).
    o_ref[...] = (jnp.dot(h, w3_ref[...], preferred_element_type=jnp.float32)
                  + b3_ref[...])


def prepare_params(params, matmul_dtype=jnp.bfloat16):
    """Fold eval-mode BatchNorm into the Linears; no shape padding.

    The BN fold is exact: (x@w + b) * s + t == x@(w*s) + (b*s + t).
    Only fc2's weight is cast to bf16 (the one MXU-heavy matmul); fc1 (K=9)
    and fc3 (N=2) stay f32 for accuracy at negligible cost.
    """
    (w1, b1, s1, t1, w2, b2, s2, t2, w3, b3) = params

    w1f = (w1 * s1).astype(jnp.float32)          # (9, 128)
    b1f = (b1 * s1 + t1).astype(jnp.float32)     # (1, 128)
    w2f = (w2 * s2).astype(matmul_dtype)         # (128, 128) bf16
    b2f = (b2 * s2 + t2).astype(jnp.float32)     # (1, 128)
    w3f = w3.astype(jnp.float32)                 # (128, 2)
    b3f = b3.astype(jnp.float32)                 # (1, 2)

    return (w1f, b1f, w2f, b2f, w3f, b3f)


def supervised_model_forward(x, prepared, *, max_tile=2048):
    """x: (B, 9) float32. Returns (B, 2) float32."""
    (w1, b1, w2, b2, w3, b3) = prepared
    B = x.shape[0]
    x = x.astype(jnp.float32)

    # Batch tile: multiple of 16 (bf16 sublane packing), capped at max_tile.
    B16 = _round_up(B, 16)
    TB = min(max_tile, B16)
    # v7x has two TensorCores; keep >=2 grid steps on the "parallel" batch axis
    # when the batch is big enough to be worth splitting.
    if B16 >= 512 and B16 // TB < 2:
        TB = _round_up((B16 + 1) // 2, 16)
    B_pad = _round_up(B, TB)
    grid = (B_pad // TB,)

    # Only a tiny batch-dim zero pad (no feature-dim padding, no dtype pass).
    if B_pad != B:
        x = jnp.pad(x, ((0, B_pad - B), (0, 0)))

    flops = 2 * B_pad * (F_IN * HIDDEN + HIDDEN * HIDDEN + HIDDEN * F_OUT)
    weight_bytes = (F_IN * HIDDEN * 4 + HIDDEN * 4            # w1, b1 (f32)
                    + HIDDEN * HIDDEN * 2 + HIDDEN * 4        # w2 (bf16), b2
                    + HIDDEN * F_OUT * 4 + F_OUT * 4)         # w3, b3 (f32)
    bytes_accessed = B_pad * (F_IN * 4 + F_OUT * 4) + weight_bytes

    out = pl.pallas_call(
        _mlp_kernel,
        out_shape=jax.ShapeDtypeStruct((B_pad, F_OUT), jnp.float32),
        grid_spec=pltpu.PrefetchScalarGridSpec(
            num_scalar_prefetch=0,
            grid=grid,
            in_specs=[
                pl.BlockSpec((TB, F_IN), lambda i: (i, 0)),        # x: streamed
                pl.BlockSpec((F_IN, HIDDEN), lambda i: (0, 0)),    # w1: resident
                pl.BlockSpec((1, HIDDEN), lambda i: (0, 0)),       # b1
                pl.BlockSpec((HIDDEN, HIDDEN), lambda i: (0, 0)),  # w2
                pl.BlockSpec((1, HIDDEN), lambda i: (0, 0)),       # b2
                pl.BlockSpec((HIDDEN, F_OUT), lambda i: (0, 0)),   # w3
                pl.BlockSpec((1, F_OUT), lambda i: (0, 0)),        # b3
            ],
            out_specs=pl.BlockSpec((TB, F_OUT), lambda i: (i, 0)),
        ),
        compiler_params=pltpu.CompilerParams(
            dimension_semantics=("parallel",),
            vmem_limit_bytes=32 * 1024 * 1024,
        ),
        cost_estimate=pl.CostEstimate(
            flops=flops, transcendentals=0, bytes_accessed=bytes_accessed),
    )(x, w1, b1, w2, b2, w3, b3)

    return out[:B]


def init_params(key):
    """Deterministic parameter init matching the PyTorch module's shapes.

    nn.Linear(in, out) weight is (out, in) in torch; we store the transpose
    (in, out). BatchNorm1d(C) running stats + affine params are kept as a
    per-channel scale/shift: scale = gamma / sqrt(var + eps),
    shift = beta - mean * scale.
    """
    ks = jax.random.split(key, 14)   # distinct keys for every tensor
    eps = 1e-5

    def linear(kw, kb, fan_in, fan_out):
        bound = 1.0 / jnp.sqrt(fan_in)
        w = jax.random.uniform(kw, (fan_in, fan_out), jnp.float32, -bound, bound)
        b = jax.random.uniform(kb, (1, fan_out), jnp.float32, -bound, bound)
        return w, b

    w1, b1 = linear(ks[0], ks[1], 9, 128)
    w2, b2 = linear(ks[2], ks[3], 128, 128)
    w3, b3 = linear(ks[4], ks[5], 128, 2)

    def bn(kg, kb, km, kv, c):
        gamma = 1.0 + 0.1 * jax.random.normal(kg, (1, c), jnp.float32)
        beta = 0.1 * jax.random.normal(kb, (1, c), jnp.float32)
        mean = 0.1 * jax.random.normal(km, (1, c), jnp.float32)
        var = jnp.abs(1.0 + 0.1 * jax.random.normal(kv, (1, c), jnp.float32))
        scale = gamma / jnp.sqrt(var + eps)
        shift = beta - mean * scale
        return scale, shift

    s1, t1 = bn(ks[6], ks[7], ks[8], ks[9], 128)
    s2, t2 = bn(ks[10], ks[11], ks[12], ks[13], 128)

    return (w1, b1, s1, t1, w2, b2, s2, t2, w3, b3)


def reference_forward(x, params):
    """Pure-JAX f32 reference (unfolded BN) for correctness checking."""
    (w1, b1, s1, t1, w2, b2, s2, t2, w3, b3) = params
    h = x @ w1 + b1
    h = h * s1 + t1
    h = jnp.where(h > 0, h, NEG_SLOPE * h)
    h = h @ w2 + b2
    h = h * s2 + t2
    h = jnp.where(h > 0, h, NEG_SLOPE * h)
    return h @ w3 + b3


if __name__ == "__main__":
    key = jax.random.PRNGKey(0)
    kx, kp = jax.random.split(key)

    B = 8  # small batch
    x = jax.random.normal(kx, (B, F_IN), jnp.float32)
    params = init_params(kp)
    prepared = prepare_params(params)

    out = supervised_model_forward(x, prepared)
    out = jax.block_until_ready(out)

    ref = reference_forward(x, params)
    assert out.shape == (B, F_OUT), out.shape
    # fc2 uses bf16 matmul operands with f32 accumulation -> relaxed tolerance.
    assert jnp.allclose(out, ref, atol=5e-2, rtol=5e-2), "mismatch vs reference"

    print("KERNEL_OK")
</pallas_src>

<mosaic_0001>
module attributes {stable_mosaic.version = 11 : i64} {
  func.func @_mlp_kernel(%arg0: i32, %arg1: memref<16x9xf32, #tpu.memory_space<vmem>>, %arg2: memref<9x128xf32, #tpu.memory_space<vmem>>, %arg3: memref<1x128xf32, #tpu.memory_space<vmem>>, %arg4: memref<128x128xbf16, #tpu.memory_space<vmem>>, %arg5: memref<1x128xf32, #tpu.memory_space<vmem>>, %arg6: memref<128x2xf32, #tpu.memory_space<vmem>>, %arg7: memref<1x2xf32, #tpu.memory_space<vmem>>, %arg8: memref<16x2xf32, #tpu.memory_space<vmem>>) attributes {dimension_semantics = [#tpu.dimension_semantics<parallel>], iteration_bounds = array<i64: 1>, scalar_prefetch = 0 : i64, scratch_operands = 0 : i64, tpu.core_type = #tpu.core_type<tc>, window_params = [{transform_indices = @transform_0, window_bounds = array<i64: 16, 9>}, {pipeline_mode = #tpu.pipeline_mode<synchronous>, transform_indices = @transform_1, window_bounds = array<i64: 9, 128>}, {pipeline_mode = #tpu.pipeline_mode<synchronous>, transform_indices = @transform_2, window_bounds = array<i64: 1, 128>}, {pipeline_mode = #tpu.pipeline_mode<synchronous>, transform_indices = @transform_3, window_bounds = array<i64: 128, 128>}, {pipeline_mode = #tpu.pipeline_mode<synchronous>, transform_indices = @transform_4, window_bounds = array<i64: 1, 128>}, {pipeline_mode = #tpu.pipeline_mode<synchronous>, transform_indices = @transform_5, window_bounds = array<i64: 128, 2>}, {pipeline_mode = #tpu.pipeline_mode<synchronous>, transform_indices = @transform_6, window_bounds = array<i64: 1, 2>}, {transform_indices = @transform_7, window_bounds = array<i64: 16, 2>}]} {
    %c0 = arith.constant 0 : index
    %c0_0 = arith.constant 0 : index
    %0 = vector.load %arg1[%c0, %c0_0] : memref<16x9xf32, #tpu.memory_space<vmem>>, vector<16x9xf32>
    %c0_1 = arith.constant 0 : index
    %c0_2 = arith.constant 0 : index
    %1 = vector.load %arg2[%c0_1, %c0_2] : memref<9x128xf32, #tpu.memory_space<vmem>>, vector<9x128xf32>
    %cst = arith.constant dense<0.000000e+00> : vector<16x128xf32>
    %2 = tpu.matmul %0, %1, %cst {dimension_numbers = #tpu.dot_dimension_numbers<[1], [0], [0], [1], [0, 0, 1, 1], [], []>} : vector<16x9xf32>, vector<9x128xf32>, vector<16x128xf32> -> vector<16x128xf32>
    %c0_3 = arith.constant 0 : index
    %c0_4 = arith.constant 0 : index
    %3 = vector.load %arg3[%c0_3, %c0_4] : memref<1x128xf32, #tpu.memory_space<vmem>>, vector<1x128xf32>
    %4 = vector.broadcast %3 : vector<1x128xf32> to vector<16x128xf32>
    %5 = arith.addf %2, %4 : vector<16x128xf32>
    %cst_5 = arith.constant 0.000000e+00 : f32
    %6 = vector.broadcast %cst_5 : f32 to vector<16x128xf32>
    %7 = arith.cmpf ogt, %5, %6 : vector<16x128xf32>
    %cst_6 = arith.constant 0.00999999977 : f32
    %8 = vector.broadcast %cst_6 : f32 to vector<16x128xf32>
    %9 = arith.mulf %8, %5 : vector<16x128xf32>
    %10 = arith.select %7, %5, %9 : vector<16x128xi1>, vector<16x128xf32>
    %11 = arith.truncf %10 : vector<16x128xf32> to vector<16x128xbf16>
    %c0_7 = arith.constant 0 : index
    %c0_8 = arith.constant 0 : index
    %12 = vector.load %arg4[%c0_7, %c0_8] : memref<128x128xbf16, #tpu.memory_space<vmem>>, vector<128x128xbf16>
    %cst_9 = arith.constant dense<0.000000e+00> : vector<16x128xf32>
    %13 = tpu.matmul %11, %12, %cst_9 {dimension_numbers = #tpu.dot_dimension_numbers<[1], [0], [0], [1], [0, 0, 1, 1], [], []>} : vector<16x128xbf16>, vector<128x128xbf16>, vector<16x128xf32> -> vector<16x128xf32>
    %c0_10 = arith.constant 0 : index
    %c0_11 = arith.constant 0 : index
    %14 = vector.load %arg5[%c0_10, %c0_11] : memref<1x128xf32, #tpu.memory_space<vmem>>, vector<1x128xf32>
    %15 = vector.broadcast %14 : vector<1x128xf32> to vector<16x128xf32>
    %16 = arith.addf %13, %15 : vector<16x128xf32>
    %cst_12 = arith.constant 0.000000e+00 : f32
    %17 = vector.broadcast %cst_12 : f32 to vector<16x128xf32>
    %18 = arith.cmpf ogt, %16, %17 : vector<16x128xf32>
    %cst_13 = arith.constant 0.00999999977 : f32
    %19 = vector.broadcast %cst_13 : f32 to vector<16x128xf32>
    %20 = arith.mulf %19, %16 : vector<16x128xf32>
    %21 = arith.select %18, %16, %20 : vector<16x128xi1>, vector<16x128xf32>
    %c0_14 = arith.constant 0 : index
    %c0_15 = arith.constant 0 : index
    %22 = vector.load %arg6[%c0_14, %c0_15] : memref<128x2xf32, #tpu.memory_space<vmem>>, vector<128x2xf32>
    %cst_16 = arith.constant dense<0.000000e+00> : vector<16x2xf32>
    %23 = tpu.matmul %21, %22, %cst_16 {dimension_numbers = #tpu.dot_dimension_numbers<[1], [0], [0], [1], [0, 0, 1, 1], [], []>} : vector<16x128xf32>, vector<128x2xf32>, vector<16x2xf32> -> vector<16x2xf32>
    %c0_17 = arith.constant 0 : index
    %c0_18 = arith.constant 0 : index
    %24 = vector.load %arg7[%c0_17, %c0_18] : memref<1x2xf32, #tpu.memory_space<vmem>>, vector<1x2xf32>
    %25 = vector.broadcast %24 : vector<1x2xf32> to vector<16x2xf32>
    %26 = arith.addf %23, %25 : vector<16x2xf32>
    %c0_19 = arith.constant 0 : index
    %c0_20 = arith.constant 0 : index
    %27 = vector.load %arg8[%c0_19, %c0_20] : memref<16x2xf32, #tpu.memory_space<vmem>>, vector<16x2xf32>
    tpu.vector_store %arg8[%c0_19, %c0_20], %26 {strides = array<i32>} : memref<16x2xf32, #tpu.memory_space<vmem>>, vector<16x2xf32>,
    return
  }
  func.func @transform_0(%arg0: i32) -> (i32, i32) {
    %c0_i32 = arith.constant 0 : i32
    %c0_i32_0 = arith.constant 0 : i32
    return %arg0, %c0_i32 : i32, i32
  }
  func.func @transform_1(%arg0: i32) -> (i32, i32) {
    %c0_i32 = arith.constant 0 : i32
    %c0_i32_0 = arith.constant 0 : i32
    %c0_i32_1 = arith.constant 0 : i32
    return %c0_i32, %c0_i32_0 : i32, i32
  }
  func.func @transform_2(%arg0: i32) -> (i32, i32) {
    %c0_i32 = arith.constant 0 : i32
    %c0_i32_0 = arith.constant 0 : i32
    %c0_i32_1 = arith.constant 0 : i32
    return %c0_i32, %c0_i32_0 : i32, i32
  }
  func.func @transform_3(%arg0: i32) -> (i32, i32) {
    %c0_i32 = arith.constant 0 : i32
    %c0_i32_0 = arith.constant 0 : i32
    %c0_i32_1 = arith.constant 0 : i32
    return %c0_i32, %c0_i32_0 : i32, i32
  }
  func.func @transform_4(%arg0: i32) -> (i32, i32) {
    %c0_i32 = arith.constant 0 : i32
    %c0_i32_0 = arith.constant 0 : i32
    %c0_i32_1 = arith.constant 0 : i32
    return %c0_i32, %c0_i32_0 : i32, i32
  }
  func.func @transform_5(%arg0: i32) -> (i32, i32) {
    %c0_i32 = arith.constant 0 : i32
    %c0_i32_0 = arith.constant 0 : i32
    %c0_i32_1 = arith.constant 0 : i32
    return %c0_i32, %c0_i32_0 : i32, i32
  }
  func.func @transform_6(%arg0: i32) -> (i32, i32) {
    %c0_i32 = arith.constant 0 : i32
    %c0_i32_0 = arith.constant 0 : i32
    %c0_i32_1 = arith.constant 0 : i32
    return %c0_i32, %c0_i32_0 : i32, i32
  }
  func.func @transform_7(%arg0: i32) -> (i32, i32) {
    %c0_i32 = arith.constant 0 : i32
    %c0_i32_0 = arith.constant 0 : i32
    return %arg0, %c0_i32 : i32, i32
  }
}

</mosaic_0001>

<bundles_post_ra>
// kernel: tpu_custom_call.1
= control target key start
LH: loop header
LB: loop body
LE: loop exit
PB: predicated region body
PF: predicated region fallthrough
CT: control target
= control target key end

     0   :  { %vm41_vm0 = vcmask 1040384   ;;  %vm34_vm1 = vcmask 72704   ;;  %vm206_vm6 = vcmask 15360   ;;  %s398_s1 = inlined_call_operand.vmem [shape: f32[9,128], index: 1, kind: input, shape index: {}]   ;;  %s399_s0 = inlined_call_operand.vmem [shape: f32[16,9], index: 0, kind: input, shape index: {}]   ;;  %s400_s3 = inlined_call_operand.vmem [shape: bf16[128,128], index: 3, kind: input, shape index: {}]   ;;  %s401_s2 = inlined_call_operand.vmem [shape: f32[1,128], index: 2, kind: input, shape index: {}]   ;;  %s402_s4 = inlined_call_operand.vmem [shape: f32[1,128], index: 4, kind: input, shape index: {}]   ;;  %s403_s5 = inlined_call_operand.vmem [shape: f32[128,2], index: 5, kind: input, shape index: {}]   ;;  %s404_s6 = inlined_call_operand.vmem [shape: f32[1,2], index: 6, kind: input, shape index: {}]   ;;  %s405_s7 = inlined_call_operand.vmem [shape: f32[16,2], index: 7, kind: output, shape index: {}]  }
   0x1   :  { %v29_v0 = vld [vmem:[%s398_s1 + $0x8] sm:$0x1]  ;;  %v28_v1 = vld [vmem:[%s398_s1] sm:$0xff]  ;;  %v255_v3 = vld [vmem:[%s400_s3 + $0x38] sm:$0xff] }
   0x2   :  { %213 = vmatpush.msk.msra.mxu0 %vm41_vm0, %v29_v0  ;;  %v26_v2 = vld [vmem:[%s399_s0] sm:$0xff]  ;;  %143 = vmatpush.bf16.msra.mxu1 %v255_v3  ;;  %v254_v4 = vld [vmem:[%s400_s3 + $0x30] sm:$0xff]  ;;  %v253_v5 = vld [vmem:[%s400_s3 + $0x28] sm:$0xff] }
   0x3   :  { %v27_v6 = vld [vmem:[%s399_s0 + $0x8] sm:$0xff]  ;;  %v252_v7 = vld [vmem:[%s400_s3 + $0x20] sm:$0xff]  ;;  %v251_v8 = vld [vmem:[%s400_s3 + $0x18] sm:$0xff] }
   0x4   :  { %60 = vmatpush.msra.mxu0 %v28_v1  ;;  %v250_v9 = vld [vmem:[%s400_s3 + $0x10] sm:$0xff]  ;;  %v249_v10 = vld [vmem:[%s400_s3 + $0x8] sm:$0xff]  ;;  %v248_v11 = vld [vmem:[%s400_s3] sm:$0xff] }
   0x5   :  { %214 = vmatmul.msk.f32.vlgmr.msra.gmra.mxu0 %vm34_vm1, %v26_v2  ;;  %v178_v12 = vld [vmem:[%s403_s5 + $0x78] sm:$0xff]  ;;  %v177_v13 = vld [vmem:[%s403_s5 + $0x70] sm:$0xff]  ;;  %v176_v14 = vld [vmem:[%s403_s5 + $0x68] sm:$0xff] }
   0x6   :  { %144 = vmatpush.bf16.msra.mxu1 %v254_v4  ;;  %183 = vmatpush.msra.mxu2 %v178_v12  ;;  %v175_v15 = vld [vmem:[%s403_s5 + $0x60] sm:$0xff]  ;;  %v174_v16 = vld [vmem:[%s403_s5 + $0x58] sm:$0xff]  ;;  %v173_v17 = vld [vmem:[%s403_s5 + $0x50] sm:$0xff] }
   0x7   :  { %v172_v18 = vld [vmem:[%s403_s5 + $0x48] sm:$0xff]  ;;  %v171_v19 = vld [vmem:[%s403_s5 + $0x40] sm:$0xff]  ;;  %v170_v20 = vld [vmem:[%s403_s5 + $0x38] sm:$0xff] }
   0x8   :  { %184 = vmatpush.msra.mxu2 %v177_v13  ;;  %v169_v22 = vld [vmem:[%s403_s5 + $0x30] sm:$0xff]  ;;  %v256_v23 = vld [vmem:[%s401_s2] ss:$0 sm:$0xff]  ;;  %v168_v24 = vld [vmem:[%s403_s5 + $0x28] sm:$0xff] }
   0x9   :  { %v167_v25 = vld [vmem:[%s403_s5 + $0x20] sm:$0xff]  ;;  %v166_v27 = vld [vmem:[%s403_s5 + $0x18] sm:$0xff]  ;;  %v165_v35 = vld [vmem:[%s403_s5 + $0x10] sm:$0xff] }
   0xa   :  { %145 = vmatpush.bf16.msra.mxu1 %v253_v5  ;;  %185 = vmatpush.msra.mxu2 %v176_v14  ;;  %v164_v36 = vld [vmem:[%s403_s5 + $0x8] sm:$0xff]  ;;  %v163_v37 = vld [vmem:[%s403_s5] sm:$0xff] }
   0xb   :  { %v257_v38 = vld [vmem:[%s402_s4] ss:$0 sm:$0xff] }
   0xc   :  { %186 = vmatpush.msra.mxu2 %v175_v15  ;;  %v258_v47 = vld [vmem:[%s404_s6] ss:$0 sm:$0xff] }
   0xd   :  { %215 = vmatmul.msk.f32.gmra.mxu0 %vm34_vm1, %v27_v6 }
   0xe   :  { %146 = vmatpush.bf16.msra.mxu1 %v252_v7  ;;  %187 = vmatpush.msra.mxu2 %v174_v16 }
  0x10   :  { %188 = vmatpush.msra.mxu2 %v173_v17 }
  0x12   :  { %147 = vmatpush.bf16.msra.mxu1 %v251_v8  ;;  %189 = vmatpush.msra.mxu2 %v172_v18 }
  0x14   :  { %190 = vmatpush.msra.mxu2 %v171_v19 }
  0x16   :  { %148 = vmatpush.bf16.msra.mxu1 %v250_v9  ;;  %191 = vmatpush.msra.mxu2 %v170_v20 }
  0x18   :  { %192 = vmatpush.msra.mxu2 %v169_v22 }
  0x1a   :  { %149 = vmatpush.bf16.msra.mxu1 %v249_v10  ;;  %193 = vmatpush.msra.mxu2 %v168_v24 }
  0x1c   :  { %194 = vmatpush.msra.mxu2 %v167_v25 }
  0x1e   :  { %150 = vmatpush.bf16.msra.mxu1 %v248_v11  ;;  %195 = vmatpush.msra.mxu2 %v166_v27 }
  0x20   :  { %196 = vmatpush.msra.mxu2 %v165_v35 }
  0x22   :  { %197 = vmatpush.msra.mxu2 %v164_v36 }
  0x24   :  { %198 = vmatpush.msra.mxu2 %v163_v37 }
  0x82   :  { %v62_v21 = vpop.f32.mrf.mxu0 }
  0x83   :  { %v63_v26 = vadd.f32 %v256_v23, %v62_v21 }
  0x85   :  { %v70_v29 = vmul.f32 0.01, %v63_v26  ;;  %vm68_vm2 = vcmp.gt.f32.partialorder %v63_v26, 0.0 }
  0x87   :  { %v72_v32 = vsel %vm68_vm2, %v63_v26, %v70_v29 }
  0x8a   :  { %v65_v28 = vpop.f32.mrf.mxu0 }
  0x8b   :  { %v66_v30 = vadd.f32 %v256_v23, %v65_v28 }
  0x8d   :  { %v71_v31 = vmul.f32 0.01, %v66_v30  ;;  %vm69_vm3 = vcmp.gt.f32.partialorder %v66_v30, 0.0 }
  0x8f   :  { %v73_v33 = vsel %vm69_vm3, %v66_v30, %v71_v31 }
  0x90   :  { %v74_v34 = vpack.c.bf16 %v73_v33, %v72_v32 }
  0x92   :  { %151 = vmatmul.bf16.vlgmr.msra.gmra.mxu1 %v74_v34 }
 0x10f   :  { %v152_v39 = vpop.f32.mrf.mxu1 }
 0x110   :  { %v153_v40 = vadd.f32 %v257_v38, %v152_v39 }
 0x112   :  { %vm157_vm4 = vcmp.gt.f32.partialorder %v153_v40, 0.0  ;;  %v159_v41 = vmul.f32 0.01, %v153_v40 }
 0x114   :  { %v161_v42 = vsel %vm157_vm4, %v153_v40, %v159_v41 }
 0x115   :  { %199 = vmatmul.f32.vlgmr.msra.gmra.mxu2 %v161_v42 }
 0x117   :  { %v154_v43 = vpop.f32.mrf.mxu1 }
 0x118   :  { %v155_v44 = vadd.f32 %v257_v38, %v154_v43 }
 0x11a   :  { %vm158_vm5 = vcmp.gt.f32.partialorder %v155_v44, 0.0  ;;  %v160_v45 = vmul.f32 0.01, %v155_v44 }
 0x11c   :  { %v162_v46 = vsel %vm158_vm5, %v155_v44, %v160_v45 }
 0x11d   :  { %202 = vmatmul.f32.gmra.mxu2 %v162_v46 }
 0x198   :  { %v200_v48 = vpop.f32.mrf.mxu2 }
 0x199   :  { %v201_v49 = vadd.f32 %v258_v47, %v200_v48 }
 0x19b   :  { %207 = vst.msk [vmem:[%s405_s7] sm:$0xff] %vm206_vm6, %v201_v49 }
 0x1a0   :  { %v203_v50 = vpop.f32.mrf.mxu2 }
 0x1a1   :  { %v204_v51 = vadd.f32 %v258_v47, %v203_v50 }
 0x1a3   :  { %208 = vst.msk [vmem:[%s405_s7 + $0x8] sm:$0xff] %vm206_vm6, %v204_v51 }

</bundles_post_ra>
